<compile_context>
chip_gen: v5e
topology: v5e:2x2
jax: 0.10.0
libtpu: 0.0.40
codegen_flags: <defaults>
</compile_context>

<pallas_src>
import math
import functools

import numpy as np
import jax
import jax.numpy as jnp
from jax.experimental import pallas as pl
from jax.experimental.pallas import tpu as pltpu


HEAD_ORDER = ("alpha_pred", "cls_score", "bbox_pred", "hwl_pred",
              "alpha_logit", "center_pred")


def _round_up(x, m):
    return ((x + m - 1) // m) * m


# ----------------------------------------------------------------------------
# Pallas kernel: one fused bf16 matmul + vectorized grouped angle expectation,
# single lane-dense store.
# ----------------------------------------------------------------------------
def fpn_predictor_kernel(x_ref, w_ref, b_ref, g_ref, s_ref, out_ref, *,
                         alpha_start, alpha_width, num_reg, lane_split):
    # Single fused, lane-dense bf16 matmul for all six heads (f32 accumulation).
    y = jnp.dot(x_ref[...], w_ref[...],
                preferred_element_type=jnp.float32) + b_ref[...]        # (bn, P) f32

    # Grouped softmax-expectation over the angle bins, fully vectorized.
    # A row-wide max over all R*A angle logits is algebraically equivalent to a
    # per-group max for the within-group softmax (the common factor cancels).
    # TODO(synk): with trained weights a group sitting >~88 below the row max would
    # underflow (denom -> 0); switch to a true per-group max if that regime matters.
    alpha = y[:, alpha_start:alpha_start + alpha_width]                 # (bn, R*A)
    m = jnp.max(alpha, axis=-1, keepdims=True)
    e = jnp.exp(alpha - m)                                              # (bn, R*A)
    # G is block-diagonal and lane-aligned: lanes [0, R) -> per-group sums,
    # lanes [lane_split, lane_split+R) -> per-group bin-value-weighted sums.
    agg = jnp.dot(e, g_ref[...], preferred_element_type=jnp.float32)    # (bn, 2*ls)
    denom = agg[:, :num_reg]
    weighted = agg[:, lane_split:lane_split + num_reg]
    rot = weighted / denom                                              # (bn, R) exact

    # Scatter rot into its slab columns with a tiny 0/1 placement matmul (no lane
    # shifts).  The target columns of y are exactly zero (zero weights and bias), so a
    # plain add merges them and the kernel does a single unmasked lane-dense store.
    rot_placed = jnp.dot(rot, s_ref[...], preferred_element_type=jnp.float32)
    out_ref[...] = y + rot_placed


# ----------------------------------------------------------------------------
# Parameter construction (mirrors the module's __init__).
# ----------------------------------------------------------------------------
def make_fpn_predictor_params(key, in_channels, num_classes, num_angle_bin,
                              cls_agnostic_bbox_reg=False):
    num_bbox_reg_classes = 2 if cls_agnostic_bbox_reg else num_classes
    specs = {
        "cls_score":   (num_classes,                          0.01),
        "bbox_pred":   (num_bbox_reg_classes * 6,             0.001),
        "hwl_pred":    (num_bbox_reg_classes * 3,             0.001),
        "alpha_logit": (2,                                     0.01),
        "alpha_pred":  (num_bbox_reg_classes * num_angle_bin,  0.01),
        "center_pred": (num_bbox_reg_classes * 3,              0.001),
    }
    params = {}
    keys = jax.random.split(key, len(specs))
    for k, (name, (out_dim, std)) in zip(keys, specs.items()):
        w = std * jax.random.normal(k, (out_dim, in_channels), dtype=jnp.float32)
        b = jnp.zeros((1, out_dim), dtype=jnp.float32)
        params[name] = (w.T, b)          # stored as (in, out) for x @ W_T + b
    return params, num_bbox_reg_classes


def _head_widths(num_classes, R, A):
    return {
        "alpha_pred":  R * A,
        "cls_score":   num_classes,
        "bbox_pred":   R * 6,
        "hwl_pred":    R * 3,
        "alpha_logit": 2,
        "center_pred": R * 3,
    }


def _pack_params(params, in_channels, num_classes, R, A):
    widths = _head_widths(num_classes, R, A)
    offsets, off = {}, 0
    for name in HEAD_ORDER:
        offsets[name] = off
        off += widths[name]
    rot_start = off                      # expected-angle columns live here
    total = off + R
    # Lane-dense slab; multiples of 128 are sufficient for v5e's 128-wide MXU.
    # (Bump to 256 on v6e/v7x if the head config grows and extra writeback is OK.)
    padded = max(128, _round_up(total, 128))

    w_cat = jnp.zeros((in_channels, padded), jnp.float32)
    b_cat = jnp.zeros((1, padded), jnp.float32)
    for name in HEAD_ORDER:
        w, b = params[name]
        o, wdt = offsets[name], widths[name]
        w_cat = w_cat.at[:, o:o + wdt].set(w)
        b_cat = b_cat.at[:, o:o + wdt].set(b)
    return w_cat, b_cat, offsets, widths, rot_start, padded


def _make_angle_matrix(R, A, lane_split):
    # Block-diagonal (R*A, 2*lane_split), lane-aligned:
    #   lanes [0, R)                      -> per-group softmax denominators
    #   lanes [lane_split, lane_split+R)  -> per-group bin-value-weighted sums
    # TODO(synk): A == 1 divides by zero in the original module too; guarded with 0.
    scale = math.pi / (A - 1) if A > 1 else 0.0
    g = np.zeros((R * A, 2 * lane_split), np.float32)
    for r in range(R):
        for i in range(A):
            g[r * A + i, r] = 1.0
            g[r * A + i, lane_split + r] = scale * i
    return jnp.asarray(g)


def _make_placement_matrix(R, rot_start, padded):
    # 0/1 matrix that scatters the (bn, R) expected angles into slab columns
    # [rot_start, rot_start+R) via one tiny MXU pass (avoids lane shifts / masked vst).
    s = np.zeros((R, padded), np.float32)
    for r in range(R):
        s[r, rot_start + r] = 1.0
    return jnp.asarray(s)


# ----------------------------------------------------------------------------
# Forward wrapper: padding, grid, pallas_call, column splitting.
# ----------------------------------------------------------------------------
def fpn_predictor_forward(x, params, num_classes, num_bbox_reg_classes,
                          num_angle_bin, block_n=1024):
    if x.ndim == 4:
        assert x.shape[2] == 1 and x.shape[3] == 1
        x = x.reshape(x.shape[0], -1)
    x = x.astype(jnp.float32)
    n, c = x.shape
    R, A = num_bbox_reg_classes, num_angle_bin

    w_cat, b_cat, offsets, widths, rot_start, padded = _pack_params(
        params, c, num_classes, R, A)
    lane_split = max(128, _round_up(R, 128))
    g = _make_angle_matrix(R, A, lane_split)
    s = _make_placement_matrix(R, rot_start, padded)

    # Pad the contraction dim to a lane multiple (zero columns are free numerically)
    # and cast the two big operands to bf16 (MXU-native rate; f32 accumulate in-kernel).
    c_pad = max(128, _round_up(c, 128))
    if c_pad != c:
        x = jnp.pad(x, ((0, 0), (0, c_pad - c)))
        w_cat = jnp.pad(w_cat, ((0, c_pad - c), (0, 0)))
    x_bf = x.astype(jnp.bfloat16)
    w_bf = w_cat.astype(jnp.bfloat16)

    # Row tiling: large tiles amortize the ~0.35 us/step grid overhead; when N is big
    # keep >= 4 grid steps so v7x's two TensorCores each get >= 2 pipelined iterations.
    if n <= block_n:
        bn = max(8, _round_up(n, 8))
    else:
        bn = min(block_n, max(128, _round_up(-(-n // 4), 8)))
    n_pad = _round_up(n, bn)
    if n_pad != n:
        x_bf = jnp.pad(x_bf, ((0, n_pad - n), (0, 0)))
    grid = (n_pad // bn,)

    kernel = functools.partial(
        fpn_predictor_kernel,
        alpha_start=offsets["alpha_pred"],
        alpha_width=R * A,
        num_reg=R,
        lane_split=lane_split,
    )

    cost = pl.CostEstimate(
        flops=2 * n_pad * c_pad * padded
              + 2 * n_pad * (R * A) * (2 * lane_split)
              + 2 * n_pad * R * padded,
        transcendentals=n_pad * R * A,
        bytes_accessed=2 * (n_pad * c_pad + c_pad * padded)
                       + 4 * (padded + R * A * 2 * lane_split + R * padded
                              + n_pad * padded),
    )

    # NOTE: w/b/g/s have constant index_maps; pipeline_mode=pl.Buffered(1) would halve
    # their VMEM, but the resident slabs are << the scoped-VMEM budget at these sizes,
    # so the default double-buffered spec is kept for maximum portability.
    slab = pl.pallas_call(
        kernel,
        out_shape=jax.ShapeDtypeStruct((n_pad, padded), jnp.float32),
        grid=grid,
        in_specs=[
            pl.BlockSpec((bn, c_pad), lambda i: (i, 0)),               # x tile (bf16)
            pl.BlockSpec((c_pad, padded), lambda i: (0, 0)),           # fused weights
            pl.BlockSpec((1, padded), lambda i: (0, 0)),               # fused bias
            pl.BlockSpec((R * A, 2 * lane_split), lambda i: (0, 0)),   # angle matrix
            pl.BlockSpec((R, padded), lambda i: (0, 0)),               # rot placement
        ],
        out_specs=pl.BlockSpec((bn, padded), lambda i: (i, 0)),
        compiler_params=pltpu.CompilerParams(
            dimension_semantics=("parallel",)),
        cost_estimate=cost,
    )(x_bf, w_bf, b_cat, g, s)

    def col(name):
        o = offsets[name]
        return slab[:n, o:o + widths[name]]

    return {
        "score":       col("cls_score"),
        "bbox_reg":    col("bbox_pred"),
        "hwl_reg":     col("hwl_pred"),
        "alpha_logit": col("alpha_logit"),
        "alpha_reg":   slab[:n, rot_start:rot_start + R],
        "center_reg":  col("center_pred"),
    }


# ----------------------------------------------------------------------------
# Pure-JAX reference (correctness check).  `match_kernel_precision=True` mirrors the
# kernel's bf16-input / f32-accumulate choice; False is the original f32 semantics.
# ----------------------------------------------------------------------------
def fpn_predictor_reference(x, params, num_classes, num_bbox_reg_classes,
                            num_angle_bin, match_kernel_precision=False):
    if x.ndim == 4:
        x = x.reshape(x.shape[0], -1)
    x = x.astype(jnp.float32)

    def lin(name):
        w, b = params[name]
        if match_kernel_precision:
            return jnp.dot(x.astype(jnp.bfloat16), w.astype(jnp.bfloat16),
                           preferred_element_type=jnp.float32) + b
        return x @ w + b

    scores = lin("cls_score")
    bbox = lin("bbox_pred")
    hwl = lin("hwl_pred")
    alog = lin("alpha_logit")
    alpha = lin("alpha_pred").reshape(-1, num_bbox_reg_classes, num_angle_bin)
    ctr = lin("center_pred")

    prob = jax.nn.softmax(alpha, axis=-1)
    i = jnp.arange(num_angle_bin, dtype=jnp.float32)
    rot = jnp.sum(prob * (math.pi / (num_angle_bin - 1)) * i, axis=-1)
    return {
        "score": scores, "bbox_reg": bbox, "hwl_reg": hwl,
        "alpha_logit": alog, "alpha_reg": rot, "center_reg": ctr,
    }


if __name__ == "__main__":
    # Small synthetic config.
    N = 16             # number of ROIs
    IN_CHANNELS = 32   # representation_size
    NUM_CLASSES = 8
    NUM_ANGLE_BIN = 8
    CLS_AGNOSTIC = False

    key = jax.random.PRNGKey(0)
    k_x, k_p = jax.random.split(key)

    # Module accepts 4D (N, C, 1, 1) input; exercise that path.
    x = jax.random.normal(k_x, (N, IN_CHANNELS, 1, 1), dtype=jnp.float32)

    params, num_bbox_reg_classes = make_fpn_predictor_params(
        k_p, IN_CHANNELS, NUM_CLASSES, NUM_ANGLE_BIN, CLS_AGNOSTIC)

    out = fpn_predictor_forward(x, params, NUM_CLASSES,
                                num_bbox_reg_classes, NUM_ANGLE_BIN)
    jax.block_until_ready(out)

    # Tight check against a reference mirroring the kernel's precision choice, plus a
    # looser check against the pure-f32 module semantics (bf16 input rounding).
    ref_bf = fpn_predictor_reference(x, params, NUM_CLASSES, num_bbox_reg_classes,
                                     NUM_ANGLE_BIN, match_kernel_precision=True)
    ref_f32 = fpn_predictor_reference(x, params, NUM_CLASSES, num_bbox_reg_classes,
                                      NUM_ANGLE_BIN, match_kernel_precision=False)
    for name in out:
        assert out[name].shape == ref_f32[name].shape, (
            name, out[name].shape, ref_f32[name].shape)
        assert jnp.allclose(out[name], ref_bf[name], atol=1e-4, rtol=1e-4), name
        assert jnp.allclose(out[name], ref_f32[name], atol=3e-3, rtol=3e-2), name

    print("KERNEL_OK")
</pallas_src>

<mosaic_0001>
module attributes {stable_mosaic.version = 11 : i64} {
  func.func @fpn_predictor_kernel(%arg0: i32, %arg1: memref<16x128xbf16, #tpu.memory_space<vmem>>, %arg2: memref<128x256xbf16, #tpu.memory_space<vmem>>, %arg3: memref<1x256xf32, #tpu.memory_space<vmem>>, %arg4: memref<64x256xf32, #tpu.memory_space<vmem>>, %arg5: memref<8x256xf32, #tpu.memory_space<vmem>>, %arg6: memref<16x256xf32, #tpu.memory_space<vmem>>) attributes {dimension_semantics = [#tpu.dimension_semantics<parallel>], iteration_bounds = array<i64: 1>, scalar_prefetch = 0 : i64, scratch_operands = 0 : i64, tpu.core_type = #tpu.core_type<tc>, window_params = [{transform_indices = @transform_0, window_bounds = array<i64: 16, 128>}, {pipeline_mode = #tpu.pipeline_mode<synchronous>, transform_indices = @transform_1, window_bounds = array<i64: 128, 256>}, {pipeline_mode = #tpu.pipeline_mode<synchronous>, transform_indices = @transform_2, window_bounds = array<i64: 1, 256>}, {pipeline_mode = #tpu.pipeline_mode<synchronous>, transform_indices = @transform_3, window_bounds = array<i64: 64, 256>}, {pipeline_mode = #tpu.pipeline_mode<synchronous>, transform_indices = @transform_4, window_bounds = array<i64: 8, 256>}, {transform_indices = @transform_5, window_bounds = array<i64: 16, 256>}]} {
    %c0 = arith.constant 0 : index
    %c0_0 = arith.constant 0 : index
    %0 = vector.load %arg1[%c0, %c0_0] : memref<16x128xbf16, #tpu.memory_space<vmem>>, vector<16x128xbf16>
    %c0_1 = arith.constant 0 : index
    %c0_2 = arith.constant 0 : index
    %1 = vector.load %arg2[%c0_1, %c0_2] : memref<128x256xbf16, #tpu.memory_space<vmem>>, vector<128x256xbf16>
    %cst = arith.constant dense<0.000000e+00> : vector<16x256xf32>
    %2 = tpu.matmul %0, %1, %cst {dimension_numbers = #tpu.dot_dimension_numbers<[1], [0], [0], [1], [0, 0, 1, 1], [], []>} : vector<16x128xbf16>, vector<128x256xbf16>, vector<16x256xf32> -> vector<16x256xf32>
    %c0_3 = arith.constant 0 : index
    %c0_4 = arith.constant 0 : index
    %3 = vector.load %arg3[%c0_3, %c0_4] : memref<1x256xf32, #tpu.memory_space<vmem>>, vector<1x256xf32>
    %4 = vector.broadcast %3 : vector<1x256xf32> to vector<16x256xf32>
    %5 = arith.addf %2, %4 : vector<16x256xf32>
    %6 = vector.extract_strided_slice %5 {offsets = [0, 0], sizes = [16, 64], strides = [1, 1]} : vector<16x256xf32> to vector<16x64xf32>
    %cst_5 = arith.constant dense<0xFF800000> : vector<16xf32>
    %7 = vector.multi_reduction <maximumf>, %6, %cst_5 [1] : vector<16x64xf32> to vector<16xf32>
    %8 = vector.shape_cast %7 : vector<16xf32> to vector<16x1xf32>
    %9 = vector.broadcast %8 : vector<16x1xf32> to vector<16x64xf32>
    %10 = arith.subf %6, %9 : vector<16x64xf32>
    %11 = math.exp %10 : vector<16x64xf32>
    %c0_6 = arith.constant 0 : index
    %c0_7 = arith.constant 0 : index
    %12 = vector.load %arg4[%c0_6, %c0_7] : memref<64x256xf32, #tpu.memory_space<vmem>>, vector<64x256xf32>
    %cst_8 = arith.constant dense<0.000000e+00> : vector<16x256xf32>
    %13 = tpu.matmul %11, %12, %cst_8 {dimension_numbers = #tpu.dot_dimension_numbers<[1], [0], [0], [1], [0, 0, 1, 1], [], []>} : vector<16x64xf32>, vector<64x256xf32>, vector<16x256xf32> -> vector<16x256xf32>
    %14 = vector.extract_strided_slice %13 {offsets = [0, 0], sizes = [16, 8], strides = [1, 1]} : vector<16x256xf32> to vector<16x8xf32>
    %15 = vector.extract_strided_slice %13 {offsets = [0, 128], sizes = [16, 8], strides = [1, 1]} : vector<16x256xf32> to vector<16x8xf32>
    %16 = arith.divf %15, %14 : vector<16x8xf32>
    %c0_9 = arith.constant 0 : index
    %c0_10 = arith.constant 0 : index
    %17 = vector.load %arg5[%c0_9, %c0_10] : memref<8x256xf32, #tpu.memory_space<vmem>>, vector<8x256xf32>
    %cst_11 = arith.constant dense<0.000000e+00> : vector<16x256xf32>
    %18 = tpu.matmul %16, %17, %cst_11 {dimension_numbers = #tpu.dot_dimension_numbers<[1], [0], [0], [1], [0, 0, 1, 1], [], []>} : vector<16x8xf32>, vector<8x256xf32>, vector<16x256xf32> -> vector<16x256xf32>
    %19 = arith.addf %5, %18 : vector<16x256xf32>
    %c0_12 = arith.constant 0 : index
    %c0_13 = arith.constant 0 : index
    %20 = vector.load %arg6[%c0_12, %c0_13] : memref<16x256xf32, #tpu.memory_space<vmem>>, vector<16x256xf32>
    tpu.vector_store %arg6[%c0_12, %c0_13], %19 {strides = array<i32>} : memref<16x256xf32, #tpu.memory_space<vmem>>, vector<16x256xf32>,
    return
  }
  func.func @transform_0(%arg0: i32) -> (i32, i32) {
    %c0_i32 = arith.constant 0 : i32
    %c0_i32_0 = arith.constant 0 : i32
    return %arg0, %c0_i32 : i32, i32
  }
  func.func @transform_1(%arg0: i32) -> (i32, i32) {
    %c0_i32 = arith.constant 0 : i32
    %c0_i32_0 = arith.constant 0 : i32
    %c0_i32_1 = arith.constant 0 : i32
    return %c0_i32, %c0_i32_0 : i32, i32
  }
  func.func @transform_2(%arg0: i32) -> (i32, i32) {
    %c0_i32 = arith.constant 0 : i32
    %c0_i32_0 = arith.constant 0 : i32
    %c0_i32_1 = arith.constant 0 : i32
    return %c0_i32, %c0_i32_0 : i32, i32
  }
  func.func @transform_3(%arg0: i32) -> (i32, i32) {
    %c0_i32 = arith.constant 0 : i32
    %c0_i32_0 = arith.constant 0 : i32
    %c0_i32_1 = arith.constant 0 : i32
    return %c0_i32, %c0_i32_0 : i32, i32
  }
  func.func @transform_4(%arg0: i32) -> (i32, i32) {
    %c0_i32 = arith.constant 0 : i32
    %c0_i32_0 = arith.constant 0 : i32
    %c0_i32_1 = arith.constant 0 : i32
    return %c0_i32, %c0_i32_0 : i32, i32
  }
  func.func @transform_5(%arg0: i32) -> (i32, i32) {
    %c0_i32 = arith.constant 0 : i32
    %c0_i32_0 = arith.constant 0 : i32
    return %arg0, %c0_i32 : i32, i32
  }
}

</mosaic_0001>

<bundles_post_ra>
// kernel: tpu_custom_call.1
= control target key start
LH: loop header
LB: loop body
LE: loop exit
PB: predicated region body
PF: predicated region fallthrough
CT: control target
= control target key end

     0   :  { %10 = vsyncpa [#allocation3], 0  ;;  %s787_s0 = inlined_call_operand.hbm [shape: bf16[16,128], index: 0, kind: input, shape index: {}]   ;;  %s788_s1 = inlined_call_operand.hbm [shape: bf16[128,256], index: 1, kind: input, shape index: {}]   ;;  %s789_s2 = inlined_call_operand.hbm [shape: f32[1,256], index: 2, kind: input, shape index: {}]   ;;  %s790_s3 = inlined_call_operand.hbm [shape: f32[64,256], index: 3, kind: input, shape index: {}]   ;;  %s791_s4 = inlined_call_operand.hbm [shape: f32[8,256], index: 4, kind: input, shape index: {}]   ;;  %s792_s5 = inlined_call_operand.hbm [shape: f32[16,256], index: 5, kind: output, shape index: {}]  }
   0x1   :  { %11 = vsyncpa [#allocation6], 0 }
   0x2   :  { %12 = vsyncpa [#allocation9], 0  ;;  %s31_s20 = sshll.u32 %s788_s1, 4  ;;  %s32_s20 = int_to_ptr.hbm [resolvable:$true] %s31_s20 }
   0x3   :  { %13 = vsyncpa [#allocation4], 0  ;;  %s693_s21 = smov [#allocation5]   ;;  %s55_s25 = sshll.u32 %s790_s3, 4  ;;  %s56_s25 = int_to_ptr.hbm [resolvable:$true] %s55_s25 }
   0x4   :  { %s33_s22 = sshll.u32 %s693_s21, 4  ;;  %s694_s26 = smov 128   ;;  %s34_s22 = int_to_ptr.vmem [resolvable:$true] %s33_s22 }
   0x5   :  { %s695_s27 = smov 8   ;;  %s696_s28 = smov [#allocation8]  }
   0x6   :  { %39 = dma.hbm_to_vmem [thread:$0]  %s32_s20, 2048, %s34_s22, [#allocation6], %s694_s26, %s694_s26, %s695_s27  }
   0x7   :  { %s57_s29 = sshll.u32 %s696_s28, 4  ;;  %s697_s30 = smov 256   ;;  %s58_s29 = int_to_ptr.vmem [resolvable:$true] %s57_s29 }
   0x8   :  { %s698_s6 = smov 16   ;;  %s18_s8 = sshll.u32 %s787_s0, 4  ;;  %s19_s8 = int_to_ptr.hbm [resolvable:$true] %s18_s8 }
   0x9   :  { %63 = dma.hbm_to_vmem [thread:$0]  %s56_s25, 2048, %s58_s29, [#allocation9], %s697_s30, %s697_s30, %s698_s6  }
   0xa   :  { %s699_s9 = smov [#allocation2]   ;;  %s45_s12 = sshll.u32 %s789_s2, 4  ;;  %s46_s12 = int_to_ptr.hbm [resolvable:$true] %s45_s12 }
   0xb   :  { %s20_s3 = sshll.u32 %s699_s9, 4  ;;  %s700_s13 = smov 64   ;;  %s21_s3 = int_to_ptr.vmem [resolvable:$true] %s20_s3 }
   0xc   :  { %s701_s14 = smov 4   ;;  %s702_s15 = smov [#allocation7]  }
   0xd   :  { %26 = dma.hbm_to_vmem [thread:$0]  %s19_s8, 128, %s21_s3, [#allocation3], %s700_s13, %s700_s13, %s701_s14  }
   0xe   :  { %s47_s16 = sshll.u32 %s702_s15, 4  ;;  %s69_s19 = sshll.u32 %s791_s4, 4  ;;  %s48_s16 = int_to_ptr.vmem [resolvable:$true] %s47_s16  ;;  %s70_s19 = int_to_ptr.hbm [resolvable:$true] %s69_s19 }
   0xf   :  { %50 = dma.hbm_to_vmem [thread:$0]  %s46_s12, 32, %s48_s16, [#allocation6]  }
  0x10   :  { %s703_s0 = smov [#allocation10]  }
  0x11   :  { %s71_s20 = sshll.u32 %s703_s0, 4  ;;  %s72_s20 = int_to_ptr.vmem [resolvable:$true] %s71_s20 }
  0x12   :  { %74 = dma.hbm_to_vmem [thread:$0]  %s70_s19, 256, %s72_s20, [#allocation9]  }
  0x13   :  { %685 = dma.done.wait [#allocation3], 128  }
  0x14   :  { %686 = vsyncadd [#allocation3], 4294967168 }
  0x15   :  { %687 = dma.done.wait [#allocation6], 2080  }
  0x16   :  { %688 = vsyncadd [#allocation6], 4294965216 }
  0x17   :  { %689 = dma.done.wait [#allocation9], 2304  }
  0x18   :  { %690 = vsyncadd [#allocation9], 4294964992  ;;  %v490_v0 = vld [vmem:[#allocation5 + $0x70] sm:$0xf]  ;;  %v520_v1 = vld [vmem:[#allocation5 + $0x74] sm:$0xf0] }
  0x19   :  { %v482_v2 = vld [vmem:[#allocation5 + $0x60] sm:$0xf]  ;;  %v491_v3 = vor.u32 %v520_v1, %v490_v0  ;;  %v518_v4 = vld [vmem:[#allocation5 + $0x64] sm:$0xf0]  ;;  %v474_v6 = vld [vmem:[#allocation5 + $0x50] sm:$0xf] }
  0x1a   :  { %v483_v5 = vor.u32 %v518_v4, %v482_v2  ;;  %v516_v7 = vld [vmem:[#allocation5 + $0x54] sm:$0xf0]  ;;  %v466_v9 = vld [vmem:[#allocation5 + $0x40] sm:$0xf]  ;;  %v514_v10 = vld [vmem:[#allocation5 + $0x44] sm:$0xf0] }
  0x1b   :  { %205 = vmatpush.bf16.msra.mxu0 %v491_v3  ;;  %v475_v8 = vor.u32 %v516_v7, %v474_v6  ;;  %v467_v11 = vor.u32 %v514_v10, %v466_v9  ;;  %v458_v12 = vld [vmem:[#allocation5 + $0x30] sm:$0xf]  ;;  %v512_v13 = vld [vmem:[#allocation5 + $0x34] sm:$0xf0]  ;;  %v450_v15 = vld [vmem:[#allocation5 + $0x20] sm:$0xf] }
  0x1c   :  { %v459_v14 = vor.u32 %v512_v13, %v458_v12  ;;  %v510_v16 = vld [vmem:[#allocation5 + $0x24] sm:$0xf0]  ;;  %v442_v18 = vld [vmem:[#allocation5 + $0x10] sm:$0xf]  ;;  %v508_v19 = vld [vmem:[#allocation5 + $0x14] sm:$0xf0] }
  0x1d   :  { %v451_v17 = vor.u32 %v510_v16, %v450_v15  ;;  %v443_v20 = vor.u32 %v508_v19, %v442_v18  ;;  %v434_v21 = vld [vmem:[#allocation5] sm:$0xf]  ;;  %v506_v22 = vld [vmem:[#allocation5 + $0x4] sm:$0xf0]  ;;  %v753_v24 = vld [vmem:[#allocation2] sm:$0xff]  ;;  %vm233_vm0 = vcmask 523264  }
  0x1e   :  { %v435_v23 = vor.u32 %v506_v22, %v434_v21  ;;  %v260_v25 = vld [vmem:[#allocation8 + $0x70] sm:$0xff]  ;;  %v261_v26 = vld [vmem:[#allocation8 + $0x78] sm:$0xff]  ;;  %v258_v27 = vld [vmem:[#allocation8 + $0x60] sm:$0xff]  ;;  %vm346_vm5 = vcmask 64512   ;;  %s704_s2 = smov [#allocation11]   ;;  %s413_s23 = sshll.u32 %s792_s5, 4  ;;  %s414_s23 = int_to_ptr.hbm [resolvable:$true] %s413_s23 }
  0x1f   :  { %206 = vmatpush.bf16.msra.mxu0 %v483_v5  ;;  %276 = vmatpush.msra.mxu2 %v260_v25  ;;  %v259_v28 = vld [vmem:[#allocation8 + $0x68] sm:$0xff]  ;;  %v756_v29 = vld [vmem:[#allocation7] sm:$0x3]  ;;  %v256_v37 = vld [vmem:[#allocation8 + $0x50] sm:$0xff]  ;;  %s411_s4 = sshll.u32 %s704_s2, 4  ;;  %s412_s4 = int_to_ptr.vmem [resolvable:$true] %s411_s4 }
  0x20   :  { %299 = vmatpush.msra.mxu3 %v261_v26  ;;  %v115_v30 = vperm.slane %v756_v29, 0  ;;  %v257_v38 = vld [vmem:[#allocation8 + $0x58] sm:$0xff]  ;;  %v254_v39 = vld [vmem:[#allocation8 + $0x40] sm:$0xff]  ;;  %v255_v40 = vld [vmem:[#allocation8 + $0x48] sm:$0xff] }
  0x21   :  { %277 = vmatpush.msra.mxu2 %v258_v27  ;;  %v252_v41 = vld [vmem:[#allocation8 + $0x30] sm:$0xff]  ;;  %v253_v42 = vld [vmem:[#allocation8 + $0x38] sm:$0xff]  ;;  %v250_v43 = vld [vmem:[#allocation8 + $0x20] sm:$0xff] }
  0x22   :  { %300 = vmatpush.msra.mxu3 %v259_v28  ;;  %v251_v44 = vld [vmem:[#allocation8 + $0x28] sm:$0xff]  ;;  %v248_v45 = vld [vmem:[#allocation8 + $0x10] sm:$0xff]  ;;  %v249_v46 = vld [vmem:[#allocation8 + $0x18] sm:$0xff] }
  0x23   :  { %207 = vmatpush.bf16.msra.mxu0 %v475_v8  ;;  %278 = vmatpush.msra.mxu2 %v256_v37  ;;  %v246_v47 = vld [vmem:[#allocation8] sm:$0xff]  ;;  %v247_v48 = vld [vmem:[#allocation8 + $0x8] sm:$0xff]  ;;  %v519_v49 = vld [vmem:[#allocation5 + $0x74] sm:$0xf] }
  0x24   :  { %301 = vmatpush.msra.mxu3 %v257_v38  ;;  %v492_v50 = vld [vmem:[#allocation5 + $0x78] sm:$0xf0]  ;;  %v517_v51 = vld [vmem:[#allocation5 + $0x64] sm:$0xf]  ;;  %v484_v53 = vld [vmem:[#allocation5 + $0x68] sm:$0xf0] }
  0x25   :  { %279 = vmatpush.msra.mxu2 %v254_v39  ;;  %v495_v52 = vor.u32 %v519_v49, %v492_v50  ;;  %v487_v54 = vor.u32 %v517_v51, %v484_v53  ;;  %v515_v55 = vld [vmem:[#allocation5 + $0x54] sm:$0xf]  ;;  %v476_v56 = vld [vmem:[#allocation5 + $0x58] sm:$0xf0]  ;;  %v513_v58 = vld [vmem:[#allocation5 + $0x44] sm:$0xf] }
  0x26   :  { %302 = vmatpush.msra.mxu3 %v255_v40  ;;  %v479_v57 = vor.u32 %v515_v55, %v476_v56  ;;  %v468_v59 = vld [vmem:[#allocation5 + $0x48] sm:$0xf0]  ;;  %v511_v5 = vld [vmem:[#allocation5 + $0x34] sm:$0xf]  ;;  %v460_v6 = vld [vmem:[#allocation5 + $0x38] sm:$0xf0] }
  0x27   :  { %208 = vmatpush.bf16.msra.mxu0 %v467_v11  ;;  %280 = vmatpush.msra.mxu2 %v252_v41  ;;  %v471_v60 = vor.u32 %v513_v58, %v468_v59  ;;  %v463_v7 = vor.u32 %v511_v5, %v460_v6  ;;  %v509_v8 = vld [vmem:[#allocation5 + $0x24] sm:$0xf]  ;;  %v452_v9 = vld [vmem:[#allocation5 + $0x28] sm:$0xf0]  ;;  %v507_v11 = vld [vmem:[#allocation5 + $0x14] sm:$0xf] }
  0x28   :  { %303 = vmatpush.msra.mxu3 %v253_v42  ;;  %219 = vmatpush.bf16.msra.mxu1 %v495_v52  ;;  %v455_v10 = vor.u32 %v509_v8, %v452_v9  ;;  %v444_v12 = vld [vmem:[#allocation5 + $0x18] sm:$0xf0]  ;;  %v436_v15 = vld [vmem:[#allocation5 + $0x8] sm:$0xf0] }
  0x29   :  { %281 = vmatpush.msra.mxu2 %v250_v43  ;;  %v447_v13 = vor.u32 %v507_v11, %v444_v12  ;;  %v345_v18 = vld [vmem:[#allocation10 + $0x8] sm:$0xff] }
  0x2a   :  { %304 = vmatpush.msra.mxu3 %v251_v44 }
  0x2b   :  { %209 = vmatpush.bf16.msra.mxu0 %v459_v14  ;;  %282 = vmatpush.msra.mxu2 %v248_v45  ;;  %v505_v14 = vld [vmem:[#allocation5 + $0x4] sm:$0xf] }
  0x2c   :  { %305 = vmatpush.msra.mxu3 %v249_v46  ;;  %220 = vmatpush.bf16.msra.mxu1 %v487_v54  ;;  %v439_v16 = vor.u32 %v505_v14, %v436_v15 }
  0x2d   :  { %283 = vmatpush.msra.mxu2 %v246_v47 }
  0x2e   :  { %306 = vmatpush.msra.mxu3 %v247_v48  ;;  %v116_v48 = vperm.slane %v756_v29, 1 }
  0x2f   :  { %210 = vmatpush.bf16.msra.mxu0 %v451_v17  ;;  %v344_v17 = vld [vmem:[#allocation10] sm:$0xff] }
  0x30   :  { %221 = vmatpush.bf16.msra.mxu1 %v479_v57  ;;  %368 = vmatpush.msrb.mxu2 %v344_v17 }
  0x31   :  { %391 = vmatpush.msrb.mxu3 %v345_v18 }
  0x33   :  { %211 = vmatpush.bf16.msra.mxu0 %v443_v20 }
  0x34   :  { %222 = vmatpush.bf16.msra.mxu1 %v471_v60 }
  0x37   :  { %212 = vmatpush.bf16.msra.mxu0 %v435_v23 }
  0x38   :  { %223 = vmatpush.bf16.msra.mxu1 %v463_v7 }
  0x3a   :  { %213 = vmatmul.bf16.vlgmr.msra.gmra.mxu0 %v753_v24 }
  0x3c   :  { %224 = vmatpush.bf16.msra.mxu1 %v455_v10 }
  0x40   :  { %225 = vmatpush.bf16.msra.mxu1 %v447_v13 }
  0x44   :  { %226 = vmatpush.bf16.msra.mxu1 %v439_v16 }
  0x47   :  { %227 = vmatmul.bf16.vlgmr.msra.gmra.mxu1 %v753_v24 }
  0xb7   :  { %v214_v31 = vpop.f32.mrf.mxu0 }
  0xb8   :  { %v759_v32 = vadd.f32 %v214_v31, %v115_v30 }
  0xba   :  { %v234_v33 = vsel %vm233_vm0, %v759_v32, -inf }
  0xbb   :  { %235 = vmax.xlane.f32.xlu0 %v234_v33 }
  0xbf   :  { %v216_v34 = vpop.f32.mrf.mxu0 }
  0xc0   :  { %v763_v35 = vadd.f32 %v216_v34, %v115_v30 }
  0xc2   :  { %v237_v36 = vsel %vm233_vm0, %v763_v35, -inf }
  0xc3   :  { %238 = vmax.xlane.f32.xlu0 %v237_v36 }
  0xc4   :  { %v228_v49 = vpop.f32.mrf.mxu1 }
  0xc5   :  { %v229_v50 = vadd.f32 %v228_v49, %v116_v48 }
  0xcc   :  { %v230_v55 = vpop.f32.mrf.mxu1 }
  0xcd   :  { %v231_v56 = vadd.f32 %v230_v55, %v116_v48 }
 0x12e   :  { %v236_v61 = vpop.xlane.xlu0 %235 }
 0x12f   :  { %v240_v62 = vsub.f32 %v759_v32, %v236_v61 }
 0x131   :  { %v242_v63 = vmul.f32 1.442695, %v240_v62 }
 0x133   :  { %533 = vpow2.f32 %v242_v63 }
 0x136   :  { %v239_v0 = vpop.xlane.xlu0 %238 }
 0x137   :  { %v241_v1 = vsub.f32 %v763_v35, %v239_v0 }
 0x139   :  { %v534_v2 = vpop.eup %533  ;;  %v244_v3 = vmul.f32 1.442695, %v241_v1 }
 0x13a   :  { %496 = vmatmul.msk.f32.vlgmr.msra.gmra.mxu2 %vm233_vm0, %v534_v2  ;;  %498 = vmatmul.msk.f32.vlgmr.msra.gmra.mxu3 %vm233_vm0, %v534_v2 }
 0x13b   :  { %535 = vpow2.f32 %v244_v3 }
 0x141   :  { %v536_v4 = vpop.eup %535 }
 0x142   :  { %497 = vmatmul.msk.f32.gmra.mxu2 %vm233_vm0, %v536_v4  ;;  %499 = vmatmul.msk.f32.gmra.mxu3 %vm233_vm0, %v536_v4 }
 0x1bd   :  { %v285_v19 = vpop.f32.mrf.mxu2  ;;  %v308_v31 = vpop.f32.mrf.mxu3 }
 0x1be   :  { %537 = vrcp.f32 %v285_v19  ;;  %v325_v25 = vand.u32 2147483648, %v285_v19  ;;  %v323_v27 = vand.u32 2147483647, %v285_v19  ;;  %vm319_vm2 = vweird.f32 %v285_v19 }
 0x1c0   :  { %v326_v24 = vor.u32 1.1754944e-38, %v325_v25  ;;  %vm324_vm4 = vcmp.eq.f32.partialorder %v323_v27, 8.507059e+37 }
 0x1c4   :  { %v538_v20 = vpop.eup %537 }
 0x1c5   :  { %v315_v21 = vmul.f32 %v538_v20, %v285_v19  ;;  %v288_v22 = vpop.f32.mrf.mxu2  ;;  %vm320_vm1 = vweird.f32 %v538_v20  ;;  %v311_v45 = vpop.f32.mrf.mxu3 }
 0x1c6   :  { %539 = vrcp.f32 %v288_v22  ;;  %vm321_vm3 = vmor %vm319_vm2, %vm320_vm1  ;;  %v340_v39 = vand.u32 2147483648, %v288_v22  ;;  %v338_v41 = vand.u32 2147483647, %v288_v22  ;;  %vm334_vm7 = vweird.f32 %v288_v22 }
 0x1c7   :  { %v316_v23 = vsub.f32 1.0, %v315_v21 }
 0x1c8   :  { %v341_v43 = vor.u32 1.1754944e-38, %v340_v39  ;;  %vm339_vm9 = vcmp.eq.f32.partialorder %v338_v41, 8.507059e+37 }
 0x1c9   :  { %v317_v26 = vmul.f32 %v538_v20, %v316_v23 }
 0x1cb   :  { %v318_v28 = vadd.f32 %v538_v20, %v317_v26 }
 0x1cc   :  { %v540_v30 = vpop.eup %539 }
 0x1cd   :  { %v322_v33 = vsel %vm321_vm3, %v538_v20, %v318_v28  ;;  %v330_v34 = vmul.f32 %v540_v30, %v288_v22  ;;  %vm335_vm6 = vweird.f32 %v540_v30 }
 0x1ce   :  { %v327_v36 = vsel %vm324_vm4, %v326_v24, %v322_v33  ;;  %vm336_vm8 = vmor %vm334_vm7, %vm335_vm6 }
 0x1cf   :  { %v328_v37 = vmul.f32 %v327_v36, %v308_v31  ;;  %v331_v38 = vsub.f32 1.0, %v330_v34 }
 0x1d1   :  { %v332_v40 = vmul.f32 %v540_v30, %v331_v38  ;;  %500 = vmatmul.msk.f32.vlgmr.msrb.gmra.mxu2 %vm346_vm5, %v328_v37  ;;  %502 = vmatmul.msk.f32.vlgmr.msrb.gmra.mxu3 %vm346_vm5, %v328_v37 }
 0x1d3   :  { %v333_v42 = vadd.f32 %v540_v30, %v332_v40 }
 0x1d5   :  { %v337_v44 = vsel %vm336_vm8, %v540_v30, %v333_v42 }
 0x1d6   :  { %v342_v46 = vsel %vm339_vm9, %v341_v43, %v337_v44 }
 0x1d7   :  { %v343_v47 = vmul.f32 %v342_v46, %v311_v45 }
 0x1d9   :  { %501 = vmatmul.msk.f32.gmra.mxu2 %vm346_vm5, %v343_v47  ;;  %503 = vmatmul.msk.f32.gmra.mxu3 %vm346_vm5, %v343_v47 }
 0x254   :  { %v370_v51 = vpop.f32.mrf.mxu2  ;;  %v393_v52 = vpop.f32.mrf.mxu3 }
 0x255   :  { %v399_v53 = vadd.f32 %v370_v51, %v759_v32  ;;  %v400_v54 = vadd.f32 %v393_v52, %v229_v50 }
 0x257   :  { %403 = vst [vmem:[#allocation11] sm:$0xff] %v399_v53 }
 0x258   :  { %404 = vst [vmem:[#allocation11 + $0x8] sm:$0xff] %v400_v54 }
 0x25c   :  { %v373_v57 = vpop.f32.mrf.mxu2  ;;  %v396_v58 = vpop.f32.mrf.mxu3 }
 0x25d   :  { %v401_v29 = vadd.f32 %v373_v57, %v763_v35  ;;  %v402_v59 = vadd.f32 %v396_v58, %v231_v56 }
 0x25f   :  { %405 = vst [vmem:[#allocation11 + $0x10] sm:$0xff] %v401_v29 }
 0x260   :  { %406 = vst [vmem:[#allocation11 + $0x18] sm:$0xff] %v402_v59 }
 0x261   :  { %419 = dma.vmem_to_hbm [thread:$0]  %s412_s4, 512, %s414_s23, [#allocation4], %s697_s30, %s697_s30, %s698_s6  }
 0x262   :  { %691 = dma.done.wait [#allocation4], 512  }
 0x263   :  { %692 = vsyncadd [#allocation4], 4294966784 }
 0x264   :  { %424 = vsyncpa [#allocation3], 1 }
 0x265   :  { %425 = vsyncpa [#allocation6], 1 }
 0x266   :  { %426 = vsyncpa [#allocation9], 1 }
 0x267   :  { %427 = vsyncpa [#allocation4], 1 }

</bundles_post_ra>
